<compile_context>
chip_gen: v7x
topology: tpu7x:2x2x1
jax: 0.10.0
libtpu: 0.0.40
codegen_flags: <defaults>
</compile_context>

<pallas_src>
import functools

import jax
import jax.numpy as jnp
from jax.experimental import pallas as pl
from jax.experimental.pallas import tpu as pltpu

BN_EPS = 1e-5


def _round_up(v, m):
    return (v + m - 1) // m * m


def _cdiv(a, b):
    return (a + b - 1) // b


@functools.lru_cache(maxsize=None)
def _vmem_limit_bytes():
    """Per-generation VMEM budget: physical capacity minus compiler headroom."""
    try:
        cap = int(pltpu.get_tpu_info().vmem_capacity_bytes)
    except Exception:  # interpret mode / older builds: conservative (v7x-sized)
        cap = 64 * 1024 * 1024
    return max(32 * 1024 * 1024, min(cap - 16 * 1024 * 1024, 112 * 1024 * 1024))


@functools.lru_cache(maxsize=None)
def _default_block_m():
    # Bigger batch tiles amortise the ~0.35us per-grid-step overhead and the
    # resident-weight cost, and get closer to the HBM roofline. v5e/v6e
    # (128 MiB VMEM) can afford 1024 rows, v7x (64 MiB) stays at 512; both are
    # multiples of 256 so the v6e/v7x MXU tiles M without remainder passes.
    return 1024 if _vmem_limit_bytes() >= 96 * 1024 * 1024 else 512


# ---------------- pass 1: batch-norm statistics (cross-tile reduction) -------
def _stats_kernel(x_ref, w1_ref, b1_ref, sum_ref, ssq_ref):
    @pl.when(pl.program_id(1) == 0)
    def _():
        sum_ref[...] = jnp.zeros_like(sum_ref)
        ssq_ref[...] = jnp.zeros_like(ssq_ref)

    # h tile in fp32 (bf16 operands, fp32 MXU accumulation).
    h = jnp.dot(x_ref[...], w1_ref[...], preferred_element_type=jnp.float32) + b1_ref[...]

    # Zero-padded batch rows contribute exactly b1 / b1^2 to these sums; that is
    # corrected once in the wrapper instead of iota+select masking every tile.
    # (1, hid) row broadcasts over the 8 sublanes of the (1, 8, hid) accumulator.
    sum_ref[...] += jnp.sum(h, axis=0, keepdims=True)
    ssq_ref[...] += jnp.sum(h * h, axis=0, keepdims=True)


# ---------------- pass 2: folded BN (scale/shift) + ReLU + Linear 2 ----------
def _apply_kernel(x_ref, w1_ref, b1_ref, scale_ref, shift_ref, w2_ref, b2_ref, o_ref):
    h = jnp.dot(x_ref[...], w1_ref[...], preferred_element_type=jnp.float32) + b1_ref[...]
    h = jnp.maximum(h * scale_ref[...] + shift_ref[...], 0.0)
    o_ref[...] = (
        jnp.dot(h.astype(jnp.bfloat16), w2_ref[...], preferred_element_type=jnp.float32)
        + b2_ref[...]
    ).astype(o_ref.dtype)


# ---------------- specs helpers -----------------------------------------------
def _resident(shape, single_buffer):
    """Constant-index input: stays resident in VMEM for the whole grid."""
    # Index never changes -> a second pipeline buffer is pure VMEM waste.
    kwargs = {"pipeline_mode": pl.Buffered(1)} if single_buffer else {}
    return pl.BlockSpec(shape, lambda *_: (0,) * len(shape), **kwargs)


# ---------------- forward (padded params) -------------------------------------
def _mlp_forward_padded(x, w1_p, b1_p, g_p, be_p, w2_p, b2_p, *,
                        proj, block_m, single_buffer):
    n, in_dim = x.shape
    in_p, hid_p = w1_p.shape
    proj_p = w2_p.shape[1]

    block_m = block_m if block_m is not None else _default_block_m()
    tm = min(block_m, _round_up(n, 8))
    tiles = _cdiv(n, tm)

    # Split pass 1 across TensorCores (v7x megacore) when there is enough work.
    # For small odd tile counts the extra zero tile would cost more than the
    # parallelism is worth on single-TC chips, so only split then if it is even.
    n_split = 2 if (tiles >= 2 and (tiles % 2 == 0 or tiles >= 8)) else 1
    tiles_per_split = _cdiv(tiles, n_split)
    n_p = n_split * tiles_per_split * tm        # padded batch length for pass 1

    # Pad/cast x only when the shape actually requires it (saves an HBM pass).
    if n_p == n and in_p == in_dim:
        x_p = x.astype(jnp.bfloat16)
    else:
        x_p = jnp.pad(x, ((0, n_p - n), (0, in_p - in_dim))).astype(jnp.bfloat16)

    vmem_limit = _vmem_limit_bytes()

    # ---- pass 1: per-split partial sums, reduced over batch tiles -----------
    part_sum, part_ssq = pl.pallas_call(
        _stats_kernel,
        grid=(n_split, tiles_per_split),
        in_specs=[
            pl.BlockSpec((tm, in_p), lambda c, j: (c * tiles_per_split + j, 0)),
            _resident((in_p, hid_p), single_buffer),     # W1
            _resident((1, hid_p), single_buffer),        # b1
        ],
        out_specs=(
            pl.BlockSpec((1, 8, hid_p), lambda c, j: (c, 0, 0)),
            pl.BlockSpec((1, 8, hid_p), lambda c, j: (c, 0, 0)),
        ),
        out_shape=(
            jax.ShapeDtypeStruct((n_split, 8, hid_p), jnp.float32),
            jax.ShapeDtypeStruct((n_split, 8, hid_p), jnp.float32),
        ),
        compiler_params=pltpu.CompilerParams(
            dimension_semantics=("parallel", "arbitrary"),   # reduction axis last
            vmem_limit_bytes=vmem_limit,
        ),
    )(x_p, w1_p, b1_p)

    # ---- fold BN once (tiny XLA ops, hoisted out of the per-tile kernel) ----
    pad_rows = float(n_p - n)                    # zero-padded rows: h == b1 exactly
    sums = part_sum[:, 0, :].sum(axis=0, keepdims=True) - pad_rows * b1_p
    ssq = part_ssq[:, 0, :].sum(axis=0, keepdims=True) - pad_rows * (b1_p * b1_p)
    inv_n = 1.0 / n
    mean = sums * inv_n
    var = jnp.maximum(ssq * inv_n - mean * mean, 0.0)
    scale = g_p * jax.lax.rsqrt(var + BN_EPS)    # h_bn = h * scale + shift
    shift = be_p - mean * scale

    # ---- pass 2: recompute h, apply folded BN + ReLU + second matmul --------
    # TODO(synk): output kept fp32 to match the module's dtype; emit bf16 here
    # to halve the HBM writeback if the caller allows it (largest win on v5e).
    out_p = pl.pallas_call(
        _apply_kernel,
        grid=(tiles,),
        in_specs=[
            pl.BlockSpec((tm, in_p), lambda i: (i, 0)),   # x tile (pipelined)
            _resident((in_p, hid_p), single_buffer),      # W1
            _resident((1, hid_p), single_buffer),         # b1
            _resident((1, hid_p), single_buffer),         # BN scale
            _resident((1, hid_p), single_buffer),         # BN shift
            _resident((hid_p, proj_p), single_buffer),    # W2
            _resident((1, proj_p), single_buffer),        # b2
        ],
        out_specs=pl.BlockSpec((tm, proj_p), lambda i: (i, 0)),   # lane-dense slab
        out_shape=jax.ShapeDtypeStruct((tiles * tm, proj_p), jnp.float32),
        compiler_params=pltpu.CompilerParams(
            dimension_semantics=("parallel",),            # shard batch tiles
            vmem_limit_bytes=vmem_limit,
        ),
    )(x_p, w1_p, b1_p, scale, shift, w2_p, b2_p)

    return out_p[:n, :proj]


_mlp_forward_jit = jax.jit(
    _mlp_forward_padded, static_argnames=("proj", "block_m", "single_buffer"))


# ---------------- public wrappers ----------------------------------------------
def prepare_params(w1, b1, gamma, beta, w2, b2):
    """Pad + cast parameters once (hoisted out of the per-forward path)."""
    in_dim, hid = w1.shape
    proj = w2.shape[1]
    in_p, hid_p, proj_p = (_round_up(d, 128) for d in (in_dim, hid, proj))

    def row(v, p):
        return jnp.pad(v.reshape(1, -1).astype(jnp.float32),
                       ((0, 0), (0, p - v.shape[0])))

    padded = (
        jnp.pad(w1, ((0, in_p - in_dim), (0, hid_p - hid))).astype(jnp.bfloat16),
        row(b1, hid_p),
        row(gamma, hid_p),
        row(beta, hid_p),
        jnp.pad(w2, ((0, hid_p - hid), (0, proj_p - proj))).astype(jnp.bfloat16),
        row(b2, proj_p),
    )
    return padded, proj


def mlp_forward(x, w1, b1, gamma, beta, w2, b2, *, block_m=None):
    padded, proj = prepare_params(w1, b1, gamma, beta, w2, b2)
    try:
        # Preferred path: single-buffered resident weights (halves their VMEM).
        return _mlp_forward_jit(x, *padded, proj=proj, block_m=block_m,
                                single_buffer=True)
    except Exception:
        # Fallback for JAX builds that reject pipeline_mode=pl.Buffered(1).
        return _mlp_forward_jit(x, *padded, proj=proj, block_m=block_m,
                                single_buffer=False)


# ---------------- params / reference --------------------------------------------
def init_params(key, in_dim, hid, proj):
    k1, k2, k3, k4 = jax.random.split(key, 4)
    lim1 = 1.0 / jnp.sqrt(in_dim)
    lim2 = 1.0 / jnp.sqrt(hid)
    w1 = jax.random.uniform(k1, (in_dim, hid), jnp.float32, -lim1, lim1)
    b1 = jax.random.uniform(k2, (hid,), jnp.float32, -lim1, lim1)
    gamma = jnp.ones((hid,), jnp.float32)   # BatchNorm1d weight
    beta = jnp.zeros((hid,), jnp.float32)   # BatchNorm1d bias
    w2 = jax.random.uniform(k3, (hid, proj), jnp.float32, -lim2, lim2)
    b2 = jax.random.uniform(k4, (proj,), jnp.float32, -lim2, lim2)
    return w1, b1, gamma, beta, w2, b2


def mlp_reference(x, w1, b1, gamma, beta, w2, b2):
    h = x @ w1 + b1
    mean = jnp.mean(h, axis=0, keepdims=True)
    var = jnp.mean((h - mean) ** 2, axis=0, keepdims=True)
    h = (h - mean) / jnp.sqrt(var + BN_EPS) * gamma + beta
    h = jnp.maximum(h, 0.0)
    return h @ w2 + b2


if __name__ == "__main__":
    key = jax.random.PRNGKey(0)
    kx, kp = jax.random.split(key)

    # Small demo shapes; deliberately not 8/128-aligned to exercise the
    # padding + padded-row-correction paths.
    batch, in_dim, hid, proj = 50, 32, 64, 16
    x = jax.random.normal(kx, (batch, in_dim), jnp.float32)
    params = init_params(kp, in_dim, hid, proj)

    out = mlp_forward(x, *params)
    jax.block_until_ready(out)

    ref = mlp_reference(x, *params)
    assert out.shape == (batch, proj)
    # bf16 matmul operands (fp32 accumulation) -> loose-ish tolerance vs fp32 ref.
    assert jnp.allclose(out, ref, atol=5e-2, rtol=5e-2), float(
        jnp.max(jnp.abs(out - ref))
    )

    print("KERNEL_OK")
</pallas_src>

<mosaic_0001>
module attributes {stable_mosaic.version = 11 : i64} {
  func.func @_stats_kernel(%arg0: i32, %arg1: i32, %arg2: memref<56x128xbf16, #tpu.memory_space<vmem>>, %arg3: memref<128x128xbf16, #tpu.memory_space<vmem>>, %arg4: memref<1x128xf32, #tpu.memory_space<vmem>>, %arg5: memref<1x8x128xf32, #tpu.memory_space<vmem>>, %arg6: memref<1x8x128xf32, #tpu.memory_space<vmem>>) attributes {dimension_semantics = [#tpu.dimension_semantics<parallel>, #tpu.dimension_semantics<arbitrary>], iteration_bounds = array<i64: 1, 1>, scalar_prefetch = 0 : i64, scratch_operands = 0 : i64, tpu.core_type = #tpu.core_type<tc>, window_params = [{transform_indices = @transform_0, window_bounds = array<i64: 56, 128>}, {pipeline_mode = #tpu.pipeline_mode<synchronous>, transform_indices = @transform_1, window_bounds = array<i64: 128, 128>}, {pipeline_mode = #tpu.pipeline_mode<synchronous>, transform_indices = @transform_2, window_bounds = array<i64: 1, 128>}, {transform_indices = @transform_3, window_bounds = array<i64: 1, 8, 128>}, {transform_indices = @transform_4, window_bounds = array<i64: 1, 8, 128>}]} {
    %c0_i32 = arith.constant 0 : i32
    %0 = arith.cmpi eq, %arg1, %c0_i32 : i32
    %1 = arith.extui %0 : i1 to i32
    %c0_i32_0 = arith.constant 0 : i32
    %2 = arith.cmpi ne, %1, %c0_i32_0 : i32
    scf.if %2 {
      %cst_20 = arith.constant 0.000000e+00 : f32
      %24 = vector.broadcast %cst_20 : f32 to vector<1x8x128xf32>
      %c0_21 = arith.constant 0 : index
      %c0_22 = arith.constant 0 : index
      %c0_23 = arith.constant 0 : index
      %25 = vector.load %arg5[%c0_21, %c0_22, %c0_23] : memref<1x8x128xf32, #tpu.memory_space<vmem>>, vector<1x8x128xf32>
      tpu.vector_store %arg5[%c0_21, %c0_22, %c0_23], %24 {strides = array<i32>} : memref<1x8x128xf32, #tpu.memory_space<vmem>>, vector<1x8x128xf32>,
      %cst_24 = arith.constant 0.000000e+00 : f32
      %26 = vector.broadcast %cst_24 : f32 to vector<1x8x128xf32>
      %c0_25 = arith.constant 0 : index
      %c0_26 = arith.constant 0 : index
      %c0_27 = arith.constant 0 : index
      %27 = vector.load %arg6[%c0_25, %c0_26, %c0_27] : memref<1x8x128xf32, #tpu.memory_space<vmem>>, vector<1x8x128xf32>
      tpu.vector_store %arg6[%c0_25, %c0_26, %c0_27], %26 {strides = array<i32>} : memref<1x8x128xf32, #tpu.memory_space<vmem>>, vector<1x8x128xf32>,
    } else {
    }
    %c0 = arith.constant 0 : index
    %c0_1 = arith.constant 0 : index
    %3 = vector.load %arg2[%c0, %c0_1] : memref<56x128xbf16, #tpu.memory_space<vmem>>, vector<56x128xbf16>
    %c0_2 = arith.constant 0 : index
    %c0_3 = arith.constant 0 : index
    %4 = vector.load %arg3[%c0_2, %c0_3] : memref<128x128xbf16, #tpu.memory_space<vmem>>, vector<128x128xbf16>
    %cst = arith.constant dense<0.000000e+00> : vector<56x128xf32>
    %5 = tpu.matmul %3, %4, %cst {dimension_numbers = #tpu.dot_dimension_numbers<[1], [0], [0], [1], [0, 0, 1, 1], [], []>} : vector<56x128xbf16>, vector<128x128xbf16>, vector<56x128xf32> -> vector<56x128xf32>
    %c0_4 = arith.constant 0 : index
    %c0_5 = arith.constant 0 : index
    %6 = vector.load %arg4[%c0_4, %c0_5] : memref<1x128xf32, #tpu.memory_space<vmem>>, vector<1x128xf32>
    %7 = vector.broadcast %6 : vector<1x128xf32> to vector<56x128xf32>
    %8 = arith.addf %5, %7 : vector<56x128xf32>
    %c0_6 = arith.constant 0 : index
    %c0_7 = arith.constant 0 : index
    %c0_8 = arith.constant 0 : index
    %9 = vector.load %arg5[%c0_6, %c0_7, %c0_8] : memref<1x8x128xf32, #tpu.memory_space<vmem>>, vector<1x8x128xf32>
    %cst_9 = arith.constant dense<0.000000e+00> : vector<128xf32>
    %10 = vector.multi_reduction <add>, %8, %cst_9 [0] : vector<56x128xf32> to vector<128xf32>
    %11 = vector.shape_cast %10 : vector<128xf32> to vector<1x128xf32>
    %12 = vector.shape_cast %11 : vector<1x128xf32> to vector<1x1x128xf32>
    %13 = vector.broadcast %12 : vector<1x1x128xf32> to vector<1x8x128xf32>
    %14 = arith.addf %9, %13 : vector<1x8x128xf32>
    %c0_10 = arith.constant 0 : index
    %c0_11 = arith.constant 0 : index
    %c0_12 = arith.constant 0 : index
    %15 = vector.load %arg5[%c0_10, %c0_11, %c0_12] : memref<1x8x128xf32, #tpu.memory_space<vmem>>, vector<1x8x128xf32>
    tpu.vector_store %arg5[%c0_10, %c0_11, %c0_12], %14 {strides = array<i32>} : memref<1x8x128xf32, #tpu.memory_space<vmem>>, vector<1x8x128xf32>,
    %c0_13 = arith.constant 0 : index
    %c0_14 = arith.constant 0 : index
    %c0_15 = arith.constant 0 : index
    %16 = vector.load %arg6[%c0_13, %c0_14, %c0_15] : memref<1x8x128xf32, #tpu.memory_space<vmem>>, vector<1x8x128xf32>
    %17 = arith.mulf %8, %8 : vector<56x128xf32>
    %cst_16 = arith.constant dense<0.000000e+00> : vector<128xf32>
    %18 = vector.multi_reduction <add>, %17, %cst_16 [0] : vector<56x128xf32> to vector<128xf32>
    %19 = vector.shape_cast %18 : vector<128xf32> to vector<1x128xf32>
    %20 = vector.shape_cast %19 : vector<1x128xf32> to vector<1x1x128xf32>
    %21 = vector.broadcast %20 : vector<1x1x128xf32> to vector<1x8x128xf32>
    %22 = arith.addf %16, %21 : vector<1x8x128xf32>
    %c0_17 = arith.constant 0 : index
    %c0_18 = arith.constant 0 : index
    %c0_19 = arith.constant 0 : index
    %23 = vector.load %arg6[%c0_17, %c0_18, %c0_19] : memref<1x8x128xf32, #tpu.memory_space<vmem>>, vector<1x8x128xf32>
    tpu.vector_store %arg6[%c0_17, %c0_18, %c0_19], %22 {strides = array<i32>} : memref<1x8x128xf32, #tpu.memory_space<vmem>>, vector<1x8x128xf32>,
    return
  }
  func.func @transform_0(%arg0: i32, %arg1: i32) -> (i32, i32) {
    %c1_i32 = arith.constant 1 : i32
    %0 = arith.muli %arg0, %c1_i32 : i32
    %1 = arith.addi %0, %arg1 : i32
    %c0_i32 = arith.constant 0 : i32
    %c0_i32_0 = arith.constant 0 : i32
    return %1, %c0_i32 : i32, i32
  }
  func.func @transform_1(%arg0: i32, %arg1: i32) -> (i32, i32) {
    %c0_i32 = arith.constant 0 : i32
    %c0_i32_0 = arith.constant 0 : i32
    %c0_i32_1 = arith.constant 0 : i32
    return %c0_i32, %c0_i32_0 : i32, i32
  }
  func.func @transform_2(%arg0: i32, %arg1: i32) -> (i32, i32) {
    %c0_i32 = arith.constant 0 : i32
    %c0_i32_0 = arith.constant 0 : i32
    %c0_i32_1 = arith.constant 0 : i32
    return %c0_i32, %c0_i32_0 : i32, i32
  }
  func.func @transform_3(%arg0: i32, %arg1: i32) -> (i32, i32, i32) {
    %c0_i32 = arith.constant 0 : i32
    %c0_i32_0 = arith.constant 0 : i32
    %c0_i32_1 = arith.constant 0 : i32
    return %arg0, %c0_i32, %c0_i32_0 : i32, i32, i32
  }
  func.func @transform_4(%arg0: i32, %arg1: i32) -> (i32, i32, i32) {
    %c0_i32 = arith.constant 0 : i32
    %c0_i32_0 = arith.constant 0 : i32
    %c0_i32_1 = arith.constant 0 : i32
    return %arg0, %c0_i32, %c0_i32_0 : i32, i32, i32
  }
}

module attributes {stable_mosaic.version = 11 : i64} {
  func.func @_apply_kernel(%arg0: i32, %arg1: memref<56x128xbf16, #tpu.memory_space<vmem>>, %arg2: memref<128x128xbf16, #tpu.memory_space<vmem>>, %arg3: memref<1x128xf32, #tpu.memory_space<vmem>>, %arg4: memref<1x128xf32, #tpu.memory_space<vmem>>, %arg5: memref<1x128xf32, #tpu.memory_space<vmem>>, %arg6: memref<128x128xbf16, #tpu.memory_space<vmem>>, %arg7: memref<1x128xf32, #tpu.memory_space<vmem>>, %arg8: memref<56x128xf32, #tpu.memory_space<vmem>>) attributes {dimension_semantics = [#tpu.dimension_semantics<parallel>], iteration_bounds = array<i64: 1>, scalar_prefetch = 0 : i64, scratch_operands = 0 : i64, tpu.core_type = #tpu.core_type<tc>, window_params = [{transform_indices = @transform_0, window_bounds = array<i64: 56, 128>}, {pipeline_mode = #tpu.pipeline_mode<synchronous>, transform_indices = @transform_1, window_bounds = array<i64: 128, 128>}, {pipeline_mode = #tpu.pipeline_mode<synchronous>, transform_indices = @transform_2, window_bounds = array<i64: 1, 128>}, {pipeline_mode = #tpu.pipeline_mode<synchronous>, transform_indices = @transform_3, window_bounds = array<i64: 1, 128>}, {pipeline_mode = #tpu.pipeline_mode<synchronous>, transform_indices = @transform_4, window_bounds = array<i64: 1, 128>}, {pipeline_mode = #tpu.pipeline_mode<synchronous>, transform_indices = @transform_5, window_bounds = array<i64: 128, 128>}, {pipeline_mode = #tpu.pipeline_mode<synchronous>, transform_indices = @transform_6, window_bounds = array<i64: 1, 128>}, {transform_indices = @transform_7, window_bounds = array<i64: 56, 128>}]} {
    %c0 = arith.constant 0 : index
    %c0_0 = arith.constant 0 : index
    %0 = vector.load %arg1[%c0, %c0_0] : memref<56x128xbf16, #tpu.memory_space<vmem>>, vector<56x128xbf16>
    %c0_1 = arith.constant 0 : index
    %c0_2 = arith.constant 0 : index
    %1 = vector.load %arg2[%c0_1, %c0_2] : memref<128x128xbf16, #tpu.memory_space<vmem>>, vector<128x128xbf16>
    %cst = arith.constant dense<0.000000e+00> : vector<56x128xf32>
    %2 = tpu.matmul %0, %1, %cst {dimension_numbers = #tpu.dot_dimension_numbers<[1], [0], [0], [1], [0, 0, 1, 1], [], []>} : vector<56x128xbf16>, vector<128x128xbf16>, vector<56x128xf32> -> vector<56x128xf32>
    %c0_3 = arith.constant 0 : index
    %c0_4 = arith.constant 0 : index
    %3 = vector.load %arg3[%c0_3, %c0_4] : memref<1x128xf32, #tpu.memory_space<vmem>>, vector<1x128xf32>
    %4 = vector.broadcast %3 : vector<1x128xf32> to vector<56x128xf32>
    %5 = arith.addf %2, %4 : vector<56x128xf32>
    %c0_5 = arith.constant 0 : index
    %c0_6 = arith.constant 0 : index
    %6 = vector.load %arg4[%c0_5, %c0_6] : memref<1x128xf32, #tpu.memory_space<vmem>>, vector<1x128xf32>
    %7 = vector.broadcast %6 : vector<1x128xf32> to vector<56x128xf32>
    %8 = arith.mulf %5, %7 : vector<56x128xf32>
    %c0_7 = arith.constant 0 : index
    %c0_8 = arith.constant 0 : index
    %9 = vector.load %arg5[%c0_7, %c0_8] : memref<1x128xf32, #tpu.memory_space<vmem>>, vector<1x128xf32>
    %10 = vector.broadcast %9 : vector<1x128xf32> to vector<56x128xf32>
    %11 = arith.addf %8, %10 : vector<56x128xf32>
    %cst_9 = arith.constant 0.000000e+00 : f32
    %12 = vector.broadcast %cst_9 : f32 to vector<56x128xf32>
    %13 = arith.maximumf %11, %12 : vector<56x128xf32>
    %14 = arith.truncf %13 : vector<56x128xf32> to vector<56x128xbf16>
    %c0_10 = arith.constant 0 : index
    %c0_11 = arith.constant 0 : index
    %15 = vector.load %arg6[%c0_10, %c0_11] : memref<128x128xbf16, #tpu.memory_space<vmem>>, vector<128x128xbf16>
    %cst_12 = arith.constant dense<0.000000e+00> : vector<56x128xf32>
    %16 = tpu.matmul %14, %15, %cst_12 {dimension_numbers = #tpu.dot_dimension_numbers<[1], [0], [0], [1], [0, 0, 1, 1], [], []>} : vector<56x128xbf16>, vector<128x128xbf16>, vector<56x128xf32> -> vector<56x128xf32>
    %c0_13 = arith.constant 0 : index
    %c0_14 = arith.constant 0 : index
    %17 = vector.load %arg7[%c0_13, %c0_14] : memref<1x128xf32, #tpu.memory_space<vmem>>, vector<1x128xf32>
    %18 = vector.broadcast %17 : vector<1x128xf32> to vector<56x128xf32>
    %19 = arith.addf %16, %18 : vector<56x128xf32>
    %c0_15 = arith.constant 0 : index
    %c0_16 = arith.constant 0 : index
    %20 = vector.load %arg8[%c0_15, %c0_16] : memref<56x128xf32, #tpu.memory_space<vmem>>, vector<56x128xf32>
    tpu.vector_store %arg8[%c0_15, %c0_16], %19 {strides = array<i32>} : memref<56x128xf32, #tpu.memory_space<vmem>>, vector<56x128xf32>,
    return
  }
  func.func @transform_0(%arg0: i32) -> (i32, i32) {
    %c0_i32 = arith.constant 0 : i32
    %c0_i32_0 = arith.constant 0 : i32
    return %arg0, %c0_i32 : i32, i32
  }
  func.func @transform_1(%arg0: i32) -> (i32, i32) {
    %c0_i32 = arith.constant 0 : i32
    %c0_i32_0 = arith.constant 0 : i32
    %c0_i32_1 = arith.constant 0 : i32
    return %c0_i32, %c0_i32_0 : i32, i32
  }
  func.func @transform_2(%arg0: i32) -> (i32, i32) {
    %c0_i32 = arith.constant 0 : i32
    %c0_i32_0 = arith.constant 0 : i32
    %c0_i32_1 = arith.constant 0 : i32
    return %c0_i32, %c0_i32_0 : i32, i32
  }
  func.func @transform_3(%arg0: i32) -> (i32, i32) {
    %c0_i32 = arith.constant 0 : i32
    %c0_i32_0 = arith.constant 0 : i32
    %c0_i32_1 = arith.constant 0 : i32
    return %c0_i32, %c0_i32_0 : i32, i32
  }
  func.func @transform_4(%arg0: i32) -> (i32, i32) {
    %c0_i32 = arith.constant 0 : i32
    %c0_i32_0 = arith.constant 0 : i32
    %c0_i32_1 = arith.constant 0 : i32
    return %c0_i32, %c0_i32_0 : i32, i32
  }
  func.func @transform_5(%arg0: i32) -> (i32, i32) {
    %c0_i32 = arith.constant 0 : i32
    %c0_i32_0 = arith.constant 0 : i32
    %c0_i32_1 = arith.constant 0 : i32
    return %c0_i32, %c0_i32_0 : i32, i32
  }
  func.func @transform_6(%arg0: i32) -> (i32, i32) {
    %c0_i32 = arith.constant 0 : i32
    %c0_i32_0 = arith.constant 0 : i32
    %c0_i32_1 = arith.constant 0 : i32
    return %c0_i32, %c0_i32_0 : i32, i32
  }
  func.func @transform_7(%arg0: i32) -> (i32, i32) {
    %c0_i32 = arith.constant 0 : i32
    %c0_i32_0 = arith.constant 0 : i32
    return %arg0, %c0_i32 : i32, i32
  }
}

module attributes {stable_mosaic.version = 11 : i64} {
  func.func @_stats_kernel(%arg0: i32, %arg1: i32, %arg2: memref<56x128xbf16, #tpu.memory_space<vmem>>, %arg3: memref<128x128xbf16, #tpu.memory_space<vmem>>, %arg4: memref<1x128xf32, #tpu.memory_space<vmem>>, %arg5: memref<1x8x128xf32, #tpu.memory_space<vmem>>, %arg6: memref<1x8x128xf32, #tpu.memory_space<vmem>>) attributes {dimension_semantics = [#tpu.dimension_semantics<parallel>, #tpu.dimension_semantics<arbitrary>], iteration_bounds = array<i64: 1, 1>, scalar_prefetch = 0 : i64, scratch_operands = 0 : i64, tpu.core_type = #tpu.core_type<tc>, window_params = [{transform_indices = @transform_0, window_bounds = array<i64: 56, 128>}, {pipeline_mode = #tpu.pipeline_mode<synchronous>, transform_indices = @transform_1, window_bounds = array<i64: 128, 128>}, {pipeline_mode = #tpu.pipeline_mode<synchronous>, transform_indices = @transform_2, window_bounds = array<i64: 1, 128>}, {transform_indices = @transform_3, window_bounds = array<i64: 1, 8, 128>}, {transform_indices = @transform_4, window_bounds = array<i64: 1, 8, 128>}]} {
    %c0_i32 = arith.constant 0 : i32
    %0 = arith.cmpi eq, %arg1, %c0_i32 : i32
    %1 = arith.extui %0 : i1 to i32
    %c0_i32_0 = arith.constant 0 : i32
    %2 = arith.cmpi ne, %1, %c0_i32_0 : i32
    scf.if %2 {
      %cst_20 = arith.constant 0.000000e+00 : f32
      %24 = vector.broadcast %cst_20 : f32 to vector<1x8x128xf32>
      %c0_21 = arith.constant 0 : index
      %c0_22 = arith.constant 0 : index
      %c0_23 = arith.constant 0 : index
      %25 = vector.load %arg5[%c0_21, %c0_22, %c0_23] : memref<1x8x128xf32, #tpu.memory_space<vmem>>, vector<1x8x128xf32>
      tpu.vector_store %arg5[%c0_21, %c0_22, %c0_23], %24 {strides = array<i32>} : memref<1x8x128xf32, #tpu.memory_space<vmem>>, vector<1x8x128xf32>,
      %cst_24 = arith.constant 0.000000e+00 : f32
      %26 = vector.broadcast %cst_24 : f32 to vector<1x8x128xf32>
      %c0_25 = arith.constant 0 : index
      %c0_26 = arith.constant 0 : index
      %c0_27 = arith.constant 0 : index
      %27 = vector.load %arg6[%c0_25, %c0_26, %c0_27] : memref<1x8x128xf32, #tpu.memory_space<vmem>>, vector<1x8x128xf32>
      tpu.vector_store %arg6[%c0_25, %c0_26, %c0_27], %26 {strides = array<i32>} : memref<1x8x128xf32, #tpu.memory_space<vmem>>, vector<1x8x128xf32>,
    } else {
    }
    %c0 = arith.constant 0 : index
    %c0_1 = arith.constant 0 : index
    %3 = vector.load %arg2[%c0, %c0_1] : memref<56x128xbf16, #tpu.memory_space<vmem>>, vector<56x128xbf16>
    %c0_2 = arith.constant 0 : index
    %c0_3 = arith.constant 0 : index
    %4 = vector.load %arg3[%c0_2, %c0_3] : memref<128x128xbf16, #tpu.memory_space<vmem>>, vector<128x128xbf16>
    %cst = arith.constant dense<0.000000e+00> : vector<56x128xf32>
    %5 = tpu.matmul %3, %4, %cst {dimension_numbers = #tpu.dot_dimension_numbers<[1], [0], [0], [1], [0, 0, 1, 1], [], []>} : vector<56x128xbf16>, vector<128x128xbf16>, vector<56x128xf32> -> vector<56x128xf32>
    %c0_4 = arith.constant 0 : index
    %c0_5 = arith.constant 0 : index
    %6 = vector.load %arg4[%c0_4, %c0_5] : memref<1x128xf32, #tpu.memory_space<vmem>>, vector<1x128xf32>
    %7 = vector.broadcast %6 : vector<1x128xf32> to vector<56x128xf32>
    %8 = arith.addf %5, %7 : vector<56x128xf32>
    %c0_6 = arith.constant 0 : index
    %c0_7 = arith.constant 0 : index
    %c0_8 = arith.constant 0 : index
    %9 = vector.load %arg5[%c0_6, %c0_7, %c0_8] : memref<1x8x128xf32, #tpu.memory_space<vmem>>, vector<1x8x128xf32>
    %cst_9 = arith.constant dense<0.000000e+00> : vector<128xf32>
    %10 = vector.multi_reduction <add>, %8, %cst_9 [0] : vector<56x128xf32> to vector<128xf32>
    %11 = vector.shape_cast %10 : vector<128xf32> to vector<1x128xf32>
    %12 = vector.shape_cast %11 : vector<1x128xf32> to vector<1x1x128xf32>
    %13 = vector.broadcast %12 : vector<1x1x128xf32> to vector<1x8x128xf32>
    %14 = arith.addf %9, %13 : vector<1x8x128xf32>
    %c0_10 = arith.constant 0 : index
    %c0_11 = arith.constant 0 : index
    %c0_12 = arith.constant 0 : index
    %15 = vector.load %arg5[%c0_10, %c0_11, %c0_12] : memref<1x8x128xf32, #tpu.memory_space<vmem>>, vector<1x8x128xf32>
    tpu.vector_store %arg5[%c0_10, %c0_11, %c0_12], %14 {strides = array<i32>} : memref<1x8x128xf32, #tpu.memory_space<vmem>>, vector<1x8x128xf32>,
    %c0_13 = arith.constant 0 : index
    %c0_14 = arith.constant 0 : index
    %c0_15 = arith.constant 0 : index
    %16 = vector.load %arg6[%c0_13, %c0_14, %c0_15] : memref<1x8x128xf32, #tpu.memory_space<vmem>>, vector<1x8x128xf32>
    %17 = arith.mulf %8, %8 : vector<56x128xf32>
    %cst_16 = arith.constant dense<0.000000e+00> : vector<128xf32>
    %18 = vector.multi_reduction <add>, %17, %cst_16 [0] : vector<56x128xf32> to vector<128xf32>
    %19 = vector.shape_cast %18 : vector<128xf32> to vector<1x128xf32>
    %20 = vector.shape_cast %19 : vector<1x128xf32> to vector<1x1x128xf32>
    %21 = vector.broadcast %20 : vector<1x1x128xf32> to vector<1x8x128xf32>
    %22 = arith.addf %16, %21 : vector<1x8x128xf32>
    %c0_17 = arith.constant 0 : index
    %c0_18 = arith.constant 0 : index
    %c0_19 = arith.constant 0 : index
    %23 = vector.load %arg6[%c0_17, %c0_18, %c0_19] : memref<1x8x128xf32, #tpu.memory_space<vmem>>, vector<1x8x128xf32>
    tpu.vector_store %arg6[%c0_17, %c0_18, %c0_19], %22 {strides = array<i32>} : memref<1x8x128xf32, #tpu.memory_space<vmem>>, vector<1x8x128xf32>,
    return
  }
  func.func @transform_0(%arg0: i32, %arg1: i32) -> (i32, i32) {
    %c1_i32 = arith.constant 1 : i32
    %0 = arith.muli %arg0, %c1_i32 : i32
    %1 = arith.addi %0, %arg1 : i32
    %c0_i32 = arith.constant 0 : i32
    %c0_i32_0 = arith.constant 0 : i32
    return %1, %c0_i32 : i32, i32
  }
  func.func @transform_1(%arg0: i32, %arg1: i32) -> (i32, i32) {
    %c0_i32 = arith.constant 0 : i32
    %c0_i32_0 = arith.constant 0 : i32
    %c0_i32_1 = arith.constant 0 : i32
    return %c0_i32, %c0_i32_0 : i32, i32
  }
  func.func @transform_2(%arg0: i32, %arg1: i32) -> (i32, i32) {
    %c0_i32 = arith.constant 0 : i32
    %c0_i32_0 = arith.constant 0 : i32
    %c0_i32_1 = arith.constant 0 : i32
    return %c0_i32, %c0_i32_0 : i32, i32
  }
  func.func @transform_3(%arg0: i32, %arg1: i32) -> (i32, i32, i32) {
    %c0_i32 = arith.constant 0 : i32
    %c0_i32_0 = arith.constant 0 : i32
    %c0_i32_1 = arith.constant 0 : i32
    return %arg0, %c0_i32, %c0_i32_0 : i32, i32, i32
  }
  func.func @transform_4(%arg0: i32, %arg1: i32) -> (i32, i32, i32) {
    %c0_i32 = arith.constant 0 : i32
    %c0_i32_0 = arith.constant 0 : i32
    %c0_i32_1 = arith.constant 0 : i32
    return %arg0, %c0_i32, %c0_i32_0 : i32, i32, i32
  }
}

module attributes {stable_mosaic.version = 11 : i64} {
  func.func @_apply_kernel(%arg0: i32, %arg1: memref<56x128xbf16, #tpu.memory_space<vmem>>, %arg2: memref<128x128xbf16, #tpu.memory_space<vmem>>, %arg3: memref<1x128xf32, #tpu.memory_space<vmem>>, %arg4: memref<1x128xf32, #tpu.memory_space<vmem>>, %arg5: memref<1x128xf32, #tpu.memory_space<vmem>>, %arg6: memref<128x128xbf16, #tpu.memory_space<vmem>>, %arg7: memref<1x128xf32, #tpu.memory_space<vmem>>, %arg8: memref<56x128xf32, #tpu.memory_space<vmem>>) attributes {dimension_semantics = [#tpu.dimension_semantics<parallel>], iteration_bounds = array<i64: 1>, scalar_prefetch = 0 : i64, scratch_operands = 0 : i64, tpu.core_type = #tpu.core_type<tc>, window_params = [{transform_indices = @transform_0, window_bounds = array<i64: 56, 128>}, {pipeline_mode = #tpu.pipeline_mode<synchronous>, transform_indices = @transform_1, window_bounds = array<i64: 128, 128>}, {pipeline_mode = #tpu.pipeline_mode<synchronous>, transform_indices = @transform_2, window_bounds = array<i64: 1, 128>}, {pipeline_mode = #tpu.pipeline_mode<synchronous>, transform_indices = @transform_3, window_bounds = array<i64: 1, 128>}, {pipeline_mode = #tpu.pipeline_mode<synchronous>, transform_indices = @transform_4, window_bounds = array<i64: 1, 128>}, {pipeline_mode = #tpu.pipeline_mode<synchronous>, transform_indices = @transform_5, window_bounds = array<i64: 128, 128>}, {pipeline_mode = #tpu.pipeline_mode<synchronous>, transform_indices = @transform_6, window_bounds = array<i64: 1, 128>}, {transform_indices = @transform_7, window_bounds = array<i64: 56, 128>}]} {
    %c0 = arith.constant 0 : index
    %c0_0 = arith.constant 0 : index
    %0 = vector.load %arg1[%c0, %c0_0] : memref<56x128xbf16, #tpu.memory_space<vmem>>, vector<56x128xbf16>
    %c0_1 = arith.constant 0 : index
    %c0_2 = arith.constant 0 : index
    %1 = vector.load %arg2[%c0_1, %c0_2] : memref<128x128xbf16, #tpu.memory_space<vmem>>, vector<128x128xbf16>
    %cst = arith.constant dense<0.000000e+00> : vector<56x128xf32>
    %2 = tpu.matmul %0, %1, %cst {dimension_numbers = #tpu.dot_dimension_numbers<[1], [0], [0], [1], [0, 0, 1, 1], [], []>} : vector<56x128xbf16>, vector<128x128xbf16>, vector<56x128xf32> -> vector<56x128xf32>
    %c0_3 = arith.constant 0 : index
    %c0_4 = arith.constant 0 : index
    %3 = vector.load %arg3[%c0_3, %c0_4] : memref<1x128xf32, #tpu.memory_space<vmem>>, vector<1x128xf32>
    %4 = vector.broadcast %3 : vector<1x128xf32> to vector<56x128xf32>
    %5 = arith.addf %2, %4 : vector<56x128xf32>
    %c0_5 = arith.constant 0 : index
    %c0_6 = arith.constant 0 : index
    %6 = vector.load %arg4[%c0_5, %c0_6] : memref<1x128xf32, #tpu.memory_space<vmem>>, vector<1x128xf32>
    %7 = vector.broadcast %6 : vector<1x128xf32> to vector<56x128xf32>
    %8 = arith.mulf %5, %7 : vector<56x128xf32>
    %c0_7 = arith.constant 0 : index
    %c0_8 = arith.constant 0 : index
    %9 = vector.load %arg5[%c0_7, %c0_8] : memref<1x128xf32, #tpu.memory_space<vmem>>, vector<1x128xf32>
    %10 = vector.broadcast %9 : vector<1x128xf32> to vector<56x128xf32>
    %11 = arith.addf %8, %10 : vector<56x128xf32>
    %cst_9 = arith.constant 0.000000e+00 : f32
    %12 = vector.broadcast %cst_9 : f32 to vector<56x128xf32>
    %13 = arith.maximumf %11, %12 : vector<56x128xf32>
    %14 = arith.truncf %13 : vector<56x128xf32> to vector<56x128xbf16>
    %c0_10 = arith.constant 0 : index
    %c0_11 = arith.constant 0 : index
    %15 = vector.load %arg6[%c0_10, %c0_11] : memref<128x128xbf16, #tpu.memory_space<vmem>>, vector<128x128xbf16>
    %cst_12 = arith.constant dense<0.000000e+00> : vector<56x128xf32>
    %16 = tpu.matmul %14, %15, %cst_12 {dimension_numbers = #tpu.dot_dimension_numbers<[1], [0], [0], [1], [0, 0, 1, 1], [], []>} : vector<56x128xbf16>, vector<128x128xbf16>, vector<56x128xf32> -> vector<56x128xf32>
    %c0_13 = arith.constant 0 : index
    %c0_14 = arith.constant 0 : index
    %17 = vector.load %arg7[%c0_13, %c0_14] : memref<1x128xf32, #tpu.memory_space<vmem>>, vector<1x128xf32>
    %18 = vector.broadcast %17 : vector<1x128xf32> to vector<56x128xf32>
    %19 = arith.addf %16, %18 : vector<56x128xf32>
    %c0_15 = arith.constant 0 : index
    %c0_16 = arith.constant 0 : index
    %20 = vector.load %arg8[%c0_15, %c0_16] : memref<56x128xf32, #tpu.memory_space<vmem>>, vector<56x128xf32>
    tpu.vector_store %arg8[%c0_15, %c0_16], %19 {strides = array<i32>} : memref<56x128xf32, #tpu.memory_space<vmem>>, vector<56x128xf32>,
    return
  }
  func.func @transform_0(%arg0: i32) -> (i32, i32) {
    %c0_i32 = arith.constant 0 : i32
    %c0_i32_0 = arith.constant 0 : i32
    return %arg0, %c0_i32 : i32, i32
  }
  func.func @transform_1(%arg0: i32) -> (i32, i32) {
    %c0_i32 = arith.constant 0 : i32
    %c0_i32_0 = arith.constant 0 : i32
    %c0_i32_1 = arith.constant 0 : i32
    return %c0_i32, %c0_i32_0 : i32, i32
  }
  func.func @transform_2(%arg0: i32) -> (i32, i32) {
    %c0_i32 = arith.constant 0 : i32
    %c0_i32_0 = arith.constant 0 : i32
    %c0_i32_1 = arith.constant 0 : i32
    return %c0_i32, %c0_i32_0 : i32, i32
  }
  func.func @transform_3(%arg0: i32) -> (i32, i32) {
    %c0_i32 = arith.constant 0 : i32
    %c0_i32_0 = arith.constant 0 : i32
    %c0_i32_1 = arith.constant 0 : i32
    return %c0_i32, %c0_i32_0 : i32, i32
  }
  func.func @transform_4(%arg0: i32) -> (i32, i32) {
    %c0_i32 = arith.constant 0 : i32
    %c0_i32_0 = arith.constant 0 : i32
    %c0_i32_1 = arith.constant 0 : i32
    return %c0_i32, %c0_i32_0 : i32, i32
  }
  func.func @transform_5(%arg0: i32) -> (i32, i32) {
    %c0_i32 = arith.constant 0 : i32
    %c0_i32_0 = arith.constant 0 : i32
    %c0_i32_1 = arith.constant 0 : i32
    return %c0_i32, %c0_i32_0 : i32, i32
  }
  func.func @transform_6(%arg0: i32) -> (i32, i32) {
    %c0_i32 = arith.constant 0 : i32
    %c0_i32_0 = arith.constant 0 : i32
    %c0_i32_1 = arith.constant 0 : i32
    return %c0_i32, %c0_i32_0 : i32, i32
  }
  func.func @transform_7(%arg0: i32) -> (i32, i32) {
    %c0_i32 = arith.constant 0 : i32
    %c0_i32_0 = arith.constant 0 : i32
    return %arg0, %c0_i32 : i32, i32
  }
}

</mosaic_0001>

<bundles_post_ra>
// kernel: _mlp_forward_padded.3
= control target key start
LH: loop header
LB: loop body
LE: loop exit
PB: predicated region body
PF: predicated region fallthrough
CT: control target
= control target key end

     0   :  { %s625_s1 = inlined_call_operand.vmem [shape: bf16[128,128], index: 1, kind: input, shape index: {}]   ;;  %s626_s0 = inlined_call_operand.vmem [shape: bf16[56,128], index: 0, kind: input, shape index: {}]   ;;  %s627_s5 = inlined_call_operand.vmem [shape: bf16[128,128], index: 5, kind: input, shape index: {}]   ;;  %s628_s2 = inlined_call_operand.vmem [shape: f32[1,128], index: 2, kind: input, shape index: {}]   ;;  %s629_s3 = inlined_call_operand.vmem [shape: f32[1,128], index: 3, kind: input, shape index: {}]   ;;  %s630_s4 = inlined_call_operand.vmem [shape: f32[1,128], index: 4, kind: input, shape index: {}]   ;;  %s631_s6 = inlined_call_operand.vmem [shape: f32[1,128], index: 6, kind: input, shape index: {}]   ;;  %s632_s7 = inlined_call_operand.vmem [shape: f32[56,128], index: 7, kind: output, shape index: {}]  }
   0x1   :  { %v472_v0 = vld [vmem:[%s625_s1] sm:$0xff]   ;;  %v473_v1 = vld [vmem:[%s625_s1 + $0x8] sm:$0xff]   ;;  %v474_v2 = vld [vmem:[%s625_s1 + $0x10] sm:$0xff]  }
   0x2   :  { %424 = vmatprep.subr.bf16.mxu0 %v472_v0  ;;  %v475_v3 = vld [vmem:[%s625_s1 + $0x18] sm:$0xff]   ;;  %v480_v4 = vld [vmem:[%s626_s0] sm:$0xff]   ;;  %v485_v7 = vld [vmem:[%s627_s5 + $0x8] sm:$0xff]  }
   0x3   :  { %425 = vmatpush3.bf16.msra.mxu0 %v472_v0  ;;  %440 = vmatprep.mubr.bf16.mxu0 %v480_v4  ;;  %v476_v5 = vld [vmem:[%s625_s1 + $0x20] sm:$0xff]   ;;  %v477_v8 = vld [vmem:[%s625_s1 + $0x28] sm:$0xff]   ;;  %v486_v9 = vld [vmem:[%s627_s5 + $0x10] sm:$0xff]  }
   0x4   :  { %426 = vmatprep.subr.bf16.mxu0 %v473_v1  ;;  %v484_v6 = vld [vmem:[%s627_s5] sm:$0xff]   ;;  %v478_v10 = vld [vmem:[%s625_s1 + $0x30] sm:$0xff]   ;;  %v487_v11 = vld [vmem:[%s627_s5 + $0x18] sm:$0xff]  }
   0x5   :  { %448 = vmatprep.subr.bf16.mxu1 %v484_v6  ;;  %v479_v12 = vld [vmem:[%s625_s1 + $0x38] sm:$0xff]   ;;  %v488_v13 = vld [vmem:[%s627_s5 + $0x20] sm:$0xff]   ;;  %v481_v14 = vld [vmem:[%s626_s0 + $0x8] sm:$0xff]  }
   0x6   :  { %449 = vmatpush3.bf16.msra.mxu1 %v484_v6  ;;  %v482_v15 = vld [vmem:[%s626_s0 + $0x10] sm:$0xff]   ;;  %v483_v16 = vld [vmem:[%s626_s0 + $0x18] ss:$0 sps:$4 sm:$0xff]   ;;  %v489_v17 = vld [vmem:[%s627_s5 + $0x28] sm:$0xff]  }
   0x7   :  { %427 = vmatpush3.bf16.msra.mxu0 %v473_v1  ;;  %450 = vmatprep.subr.bf16.mxu1 %v485_v7  ;;  %v490_v18 = vld [vmem:[%s627_s5 + $0x30] sm:$0xff]   ;;  %v491_v19 = vld [vmem:[%s627_s5 + $0x38] sm:$0xff]   ;;  %v376_v20 = vld [vmem:[%s628_s2] ss:$0 sm:$0xff] }
   0x8   :  { %428 = vmatprep.subr.bf16.mxu0 %v474_v2  ;;  %v389_v22 = vld [vmem:[%s629_s3] ss:$0 sm:$0xff] }
   0x9   :  { %v390_v25 = vld [vmem:[%s630_s4] ss:$0 sm:$0xff] }
   0xa   :  { %451 = vmatpush3.bf16.msra.mxu1 %v485_v7  ;;  %v391_v63 = vld [vmem:[%s631_s6] ss:$0 sm:$0xff] }
   0xb   :  { %429 = vmatpush3.bf16.msra.mxu0 %v474_v2  ;;  %452 = vmatprep.subr.bf16.mxu1 %v486_v9 }
   0xc   :  { %430 = vmatprep.subr.bf16.mxu0 %v475_v3 }
   0xe   :  { %453 = vmatpush3.bf16.msra.mxu1 %v486_v9 }
   0xf   :  { %431 = vmatpush3.bf16.msra.mxu0 %v475_v3  ;;  %454 = vmatprep.subr.bf16.mxu1 %v487_v11 }
  0x10   :  { %432 = vmatprep.subr.bf16.mxu0 %v476_v5 }
  0x12   :  { %455 = vmatpush3.bf16.msra.mxu1 %v487_v11 }
  0x13   :  { %433 = vmatpush3.bf16.msra.mxu0 %v476_v5  ;;  %456 = vmatprep.subr.bf16.mxu1 %v488_v13 }
  0x14   :  { %434 = vmatprep.subr.bf16.mxu0 %v477_v8 }
  0x16   :  { %457 = vmatpush3.bf16.msra.mxu1 %v488_v13 }
  0x17   :  { %435 = vmatpush3.bf16.msra.mxu0 %v477_v8  ;;  %458 = vmatprep.subr.bf16.mxu1 %v489_v17 }
  0x18   :  { %436 = vmatprep.subr.bf16.mxu0 %v478_v10 }
  0x1a   :  { %459 = vmatpush3.bf16.msra.mxu1 %v489_v17 }
  0x1b   :  { %437 = vmatpush3.bf16.msra.mxu0 %v478_v10  ;;  %460 = vmatprep.subr.bf16.mxu1 %v490_v18 }
  0x1c   :  { %438 = vmatprep.subr.bf16.mxu0 %v479_v12 }
  0x1e   :  { %461 = vmatpush3.bf16.msra.mxu1 %v490_v18 }
  0x1f   :  { %439 = vmatpush3.bf16.msra.mxu0 %v479_v12  ;;  %462 = vmatprep.subr.bf16.mxu1 %v491_v19 }
  0x22   :  { %441 = vmatmul.mubr.bf16.vlgmr.msra.gmra.mrb[0].mxu0 %v481_v14  ;;  %463 = vmatpush3.bf16.msra.mxu1 %v491_v19 }
  0x23   :  { %444 = vmatprep.mubr.bf16.mxu0 %v482_v15 }
  0x2a   :  { %445 = vmatmul.mubr.bf16.gmra.mrb[4].mxu0 %v483_v16 }
  0xf5   :  { %v442_v21 = vpop.f32.mrb[0].mxu0 }
  0xf6   :  { %v170_v23 = vadd.f32 %v442_v21, %v376_v20  ;;  %v161_v24 = vpop.f32.mrb[1].mxu0 }
  0xf7   :  { %v162_v26 = vadd.f32 %v376_v20, %v161_v24  ;;  %v443_v27 = vpop.f32.mrb[2].mxu0 }
  0xf8   :  { %v200_v28 = vmul.f32 %v389_v22, %v170_v23  ;;  %v173_v29 = vadd.f32 %v443_v27, %v376_v20  ;;  %v164_v30 = vpop.f32.mrb[3].mxu0 }
  0xf9   :  { %v198_v31 = vmul.f32 %v389_v22, %v162_v26  ;;  %v165_v32 = vadd.f32 %v376_v20, %v164_v30 }
  0xfa   :  { %v214_v33 = vadd.f32 %v390_v25, %v200_v28  ;;  %v201_v34 = vmul.f32 %v389_v22, %v173_v29 }
  0xfb   :  { %v199_v35 = vmul.f32 %v389_v22, %v165_v32  ;;  %v212_v36 = vadd.f32 %v390_v25, %v198_v31 }
  0xfc   :  { %v215_v37 = vadd.f32 %v390_v25, %v201_v34  ;;  %v221_v40 = vmax.f32 %v214_v33, 0.0 }
  0xfd   :  { %v446_v38 = vpop.f32.mrb[4].mxu0  ;;  %v213_v39 = vadd.f32 %v390_v25, %v199_v35  ;;  %v219_v46 = vmax.f32 %v212_v36, 0.0 }
  0xfe   :  { %v222_v41 = vmax.f32 %v215_v37, 0.0  ;;  %v186_v42 = vadd.f32 %v446_v38, %v376_v20  ;;  %v177_v43 = vpop.f32.mrb[5].mxu0 }
  0xff   :  { %v178_v44 = vadd.f32 %v376_v20, %v177_v43  ;;  %v447_v45 = vpop.f32.mrb[6].mxu0  ;;  %v220_v47 = vmax.f32 %v213_v39, 0.0 }
 0x100   :  { %v204_v48 = vmul.f32 %v389_v22, %v186_v42  ;;  %v180_v49 = vpop.f32.mrb[7].mxu0  ;;  %v227_v50 = vpack.c.bf16 %v222_v41, %v221_v40 }
 0x101   :  { %v202_v51 = vmul.f32 %v389_v22, %v178_v44  ;;  %v181_v52 = vadd.f32 %v376_v20, %v180_v49  ;;  %v226_v53 = vpack.c.bf16 %v220_v47, %v219_v46 }
 0x102   :  { %v218_v54 = vadd.f32 %v390_v25, %v204_v48 }
 0x103   :  { %v216_v55 = vadd.f32 %v390_v25, %v202_v51  ;;  %v203_v56 = vmul.f32 %v389_v22, %v181_v52  ;;  %464 = vmatprep.mubr.bf16.mxu1 %v226_v53 }
 0x104   :  { %465 = vmatmul.mubr.bf16.vlgmr.msra.gmra.mrb[0].mxu1 %v227_v50  ;;  %v225_v58 = vmax.f32 %v218_v54, 0.0 }
 0x105   :  { %v217_v57 = vadd.f32 %v390_v25, %v203_v56  ;;  %v223_v59 = vmax.f32 %v216_v55, 0.0 }
 0x106   :  { %v229_v62 = vpack.c.bf16 %v225_v58, %v225_v58 }
 0x107   :  { %v224_v60 = vmax.f32 %v217_v57, 0.0 }
 0x109   :  { %v228_v61 = vpack.c.bf16 %v224_v60, %v223_v59 }
 0x10b   :  { %468 = vmatprep.mubr.bf16.mxu1 %v228_v61 }
 0x10c   :  { %469 = vmatmul.mubr.bf16.gmra.mrb[4].mxu1 %v229_v62 }
 0x1d7   :  { %v466_v0 = vpop.f32.mrb[0].mxu1 }
 0x1d8   :  { %v344_v1 = vadd.f32 %v466_v0, %v391_v63  ;;  %v335_v2 = vpop.f32.mrb[1].mxu1 }
 0x1d9   :  { %v336_v3 = vadd.f32 %v391_v63, %v335_v2  ;;  %v467_v4 = vpop.f32.mrb[2].mxu1 }
 0x1da   :  { %367 = vst [vmem:[%s632_s7 + $0x10] sm:$0xff] %v344_v1  ;;  %v347_v5 = vadd.f32 %v467_v4, %v391_v63  ;;  %v338_v6 = vpop.f32.mrb[3].mxu1 }
 0x1db   :  { %365 = vst [vmem:[%s632_s7] sm:$0xff] %v336_v3  ;;  %v339_v7 = vadd.f32 %v391_v63, %v338_v6 }
 0x1dc   :  { %368 = vst [vmem:[%s632_s7 + $0x18] sm:$0xff] %v347_v5 }
 0x1dd   :  { %366 = vst [vmem:[%s632_s7 + $0x8] sm:$0xff] %v339_v7 }
 0x1df   :  { %v470_v8 = vpop.f32.mrb[4].mxu1 }
 0x1e0   :  { %v360_v9 = vadd.f32 %v470_v8, %v391_v63  ;;  %v351_v10 = vpop.f32.mrb[5].mxu1 }
 0x1e1   :  { %v352_v11 = vadd.f32 %v391_v63, %v351_v10  ;;  %v471_v12 = vpop.f32.mrb[6].mxu1 }
 0x1e2   :  { %371 = vst [vmem:[%s632_s7 + $0x30] sm:$0xff] %v360_v9  ;;  %v354_v13 = vpop.f32.mrb[7].mxu1 }
 0x1e3   :  { %369 = vst [vmem:[%s632_s7 + $0x20] sm:$0xff] %v352_v11  ;;  %v355_v14 = vadd.f32 %v391_v63, %v354_v13 }
 0x1e5   :  { %370 = vst [vmem:[%s632_s7 + $0x28] sm:$0xff] %v355_v14 }

// kernel: _mlp_forward_padded.2
= control target key start
LH: loop header
LB: loop body
LE: loop exit
PB: predicated region body
PF: predicated region fallthrough
CT: control target
= control target key end

     0   :  { %s408_s1 = inlined_call_operand.vmem [shape: bf16[128,128], index: 1, kind: input, shape index: {}]   ;;  %s409_s0 = inlined_call_operand.vmem [shape: bf16[56,128], index: 0, kind: input, shape index: {}]   ;;  %s410_s2 = inlined_call_operand.vmem [shape: f32[1,128], index: 2, kind: input, shape index: {}]   ;;  %s411_s3 = inlined_call_operand.vmem [shape: f32[1,8,128], index: 3, kind: output, shape index: {0}]   ;;  %s412_s4 = inlined_call_operand.vmem [shape: f32[1,8,128], index: 4, kind: output, shape index: {1}]  }
   0x1   :  { %v326_v0 = vld [vmem:[%s408_s1] sm:$0xff]   ;;  %v327_v1 = vld [vmem:[%s408_s1 + $0x8] sm:$0xff]   ;;  %v328_v2 = vld [vmem:[%s408_s1 + $0x10] sm:$0xff]  }
   0x2   :  { %285 = vmatprep.subr.bf16.mxu0 %v326_v0  ;;  %309 = vmatprep.subr.bf16.mxu1 %v326_v0  ;;  %v329_v3 = vld [vmem:[%s408_s1 + $0x18] sm:$0xff]   ;;  %v334_v4 = vld [vmem:[%s409_s0] sm:$0xff]   ;;  %v336_v5 = vld [vmem:[%s409_s0 + $0x10] sm:$0xff]  }
   0x3   :  { %286 = vmatpush3.bf16.msra.mxu0 %v326_v0  ;;  %317 = vmatpush3.bf16.msra.mxu1 %v326_v0  ;;  %v330_v6 = vld [vmem:[%s408_s1 + $0x20] sm:$0xff]   ;;  %v331_v7 = vld [vmem:[%s408_s1 + $0x28] sm:$0xff]   ;;  %v332_v8 = vld [vmem:[%s408_s1 + $0x30] sm:$0xff]  }
   0x4   :  { %287 = vmatprep.subr.bf16.mxu0 %v327_v1  ;;  %310 = vmatprep.subr.bf16.mxu1 %v327_v1  ;;  %v333_v9 = vld [vmem:[%s408_s1 + $0x38] sm:$0xff]   ;;  %v335_v10 = vld [vmem:[%s409_s0 + $0x8] sm:$0xff]   ;;  %v260_v12 = vld [vmem:[%s410_s2] ss:$0 sm:$0xff] }
   0x5   :  { %301 = vmatprep.mubr.bf16.mxu0 %v334_v4  ;;  %305 = vmatprep.mubr.bf16.mxu1 %v336_v5  ;;  %v337_v11 = vld [vmem:[%s409_s0 + $0x18] ss:$0 sps:$4 sm:$0xff]  }
   0x7   :  { %288 = vmatpush3.bf16.msra.mxu0 %v327_v1  ;;  %318 = vmatpush3.bf16.msra.mxu1 %v327_v1 }
   0x8   :  { %289 = vmatprep.subr.bf16.mxu0 %v328_v2  ;;  %311 = vmatprep.subr.bf16.mxu1 %v328_v2 }
   0xb   :  { %290 = vmatpush3.bf16.msra.mxu0 %v328_v2  ;;  %319 = vmatpush3.bf16.msra.mxu1 %v328_v2 }
   0xc   :  { %291 = vmatprep.subr.bf16.mxu0 %v329_v3  ;;  %312 = vmatprep.subr.bf16.mxu1 %v329_v3 }
   0xf   :  { %292 = vmatpush3.bf16.msra.mxu0 %v329_v3  ;;  %320 = vmatpush3.bf16.msra.mxu1 %v329_v3 }
  0x10   :  { %293 = vmatprep.subr.bf16.mxu0 %v330_v6  ;;  %313 = vmatprep.subr.bf16.mxu1 %v330_v6 }
  0x13   :  { %294 = vmatpush3.bf16.msra.mxu0 %v330_v6  ;;  %321 = vmatpush3.bf16.msra.mxu1 %v330_v6 }
  0x14   :  { %295 = vmatprep.subr.bf16.mxu0 %v331_v7  ;;  %314 = vmatprep.subr.bf16.mxu1 %v331_v7 }
  0x17   :  { %296 = vmatpush3.bf16.msra.mxu0 %v331_v7  ;;  %322 = vmatpush3.bf16.msra.mxu1 %v331_v7 }
  0x18   :  { %297 = vmatprep.subr.bf16.mxu0 %v332_v8  ;;  %315 = vmatprep.subr.bf16.mxu1 %v332_v8 }
  0x1b   :  { %298 = vmatpush3.bf16.msra.mxu0 %v332_v8  ;;  %323 = vmatpush3.bf16.msra.mxu1 %v332_v8 }
  0x1c   :  { %299 = vmatprep.subr.bf16.mxu0 %v333_v9  ;;  %316 = vmatprep.subr.bf16.mxu1 %v333_v9 }
  0x1f   :  { %300 = vmatpush3.bf16.msra.mxu0 %v333_v9  ;;  %324 = vmatpush3.bf16.msra.mxu1 %v333_v9 }
  0x22   :  { %302 = vmatmul.mubr.bf16.vlgmr.msra.gmra.mrb[0].mxu0 %v335_v10  ;;  %306 = vmatmul.mubr.bf16.vlgmr.msra.gmra.mrb[0].mxu1 %v337_v11 }
  0xf5   :  { %v303_v13 = vpop.f32.mrb[0].mxu0  ;;  %v307_v14 = vpop.f32.mrb[0].mxu1 }
  0xf6   :  { %v179_v15 = vpop.f32.mrb[1].mxu0  ;;  %v195_v16 = vpop.f32.mrb[1].mxu1  ;;  %v188_v22 = vadd.f32 %v303_v13, %v260_v12  ;;  %v204_v37 = vadd.f32 %v307_v14, %v260_v12 }
  0xf7   :  { %v180_v17 = vadd.f32 %v260_v12, %v179_v15  ;;  %v304_v18 = vpop.f32.mrb[2].mxu0  ;;  %v308_v19 = vpop.f32.mrb[2].mxu1  ;;  %v196_v24 = vadd.f32 %v260_v12, %v195_v16 }
  0xf8   :  { %v182_v20 = vpop.f32.mrb[3].mxu0  ;;  %v198_v21 = vpop.f32.mrb[3].mxu1  ;;  %v191_v26 = vadd.f32 %v304_v18, %v260_v12  ;;  %v227_v29 = vmul.f32 %v188_v22, %v188_v22  ;;  %v231_v43 = vmul.f32 %v204_v37, %v204_v37 }
  0xf9   :  { %v183_v23 = vadd.f32 %v260_v12, %v182_v20  ;;  %v225_v25 = vmul.f32 %v180_v17, %v180_v17  ;;  %v229_v32 = vmul.f32 %v196_v24, %v196_v24  ;;  %v199_v36 = vadd.f32 %v260_v12, %v198_v21 }
  0xfa   :  { %v228_v33 = vmul.f32 %v191_v26, %v191_v26 }
  0xfb   :  { %v210_v27 = vadd.f32 %v183_v23, %v180_v17  ;;  %v226_v28 = vmul.f32 %v183_v23, %v183_v23  ;;  %v230_v42 = vmul.f32 %v199_v36, %v199_v36 }
  0xfd   :  { %v211_v30 = vadd.f32 %v210_v27, %v188_v22  ;;  %v232_v31 = vadd.f32 %v226_v28, %v225_v25 }
  0xff   :  { %v233_v34 = vadd.f32 %v232_v31, %v227_v29  ;;  %v212_v35 = vadd.f32 %v211_v30, %v191_v26 }
 0x101   :  { %v213_v38 = vadd.f32 %v212_v35, %v196_v24  ;;  %v234_v39 = vadd.f32 %v233_v34, %v228_v33 }
 0x103   :  { %v235_v40 = vadd.f32 %v234_v39, %v229_v32  ;;  %v214_v41 = vadd.f32 %v213_v38, %v199_v36 }
 0x105   :  { %v215_v44 = vadd.f32 %v214_v41, %v204_v37  ;;  %v236_v45 = vadd.f32 %v235_v40, %v230_v42 }
 0x107   :  { %v216_v46 = vrot.slane %v215_v44, 4  ;;  %v237_v47 = vadd.f32 %v236_v45, %v231_v43 }
 0x109   :  { %v217_v48 = vadd.f32 %v216_v46, %v215_v44  ;;  %v238_v49 = vrot.slane %v237_v47, 4 }
 0x10b   :  { %v218_v50 = vrot.slane %v217_v48, 2  ;;  %v239_v51 = vadd.f32 %v238_v49, %v237_v47 }
 0x10d   :  { %v219_v52 = vadd.f32 %v218_v50, %v217_v48  ;;  %v240_v53 = vrot.slane %v239_v51, 2 }
 0x10f   :  { %v220_v54 = vrot.slane %v219_v52, 1  ;;  %v241_v55 = vadd.f32 %v240_v53, %v239_v51 }
 0x111   :  { %v221_v56 = vadd.f32 %v220_v54, %v219_v52  ;;  %v242_v57 = vrot.slane %v241_v55, 1 }
 0x113   :  { %v243_v58 = vadd.f32 %v242_v57, %v241_v55  ;;  %223 = vst [vmem:[%s411_s3] sm:$0xff] %v221_v56 }
 0x115   :  { %245 = vst [vmem:[%s412_s4] sm:$0xff] %v243_v58 }

// kernel: _mlp_forward_padded.2
= control target key start
LH: loop header
LB: loop body
LE: loop exit
PB: predicated region body
PF: predicated region fallthrough
CT: control target
= control target key end

     0   :  { %s408_s1 = inlined_call_operand.vmem [shape: bf16[128,128], index: 1, kind: input, shape index: {}]   ;;  %s409_s0 = inlined_call_operand.vmem [shape: bf16[56,128], index: 0, kind: input, shape index: {}]   ;;  %s410_s2 = inlined_call_operand.vmem [shape: f32[1,128], index: 2, kind: input, shape index: {}]   ;;  %s411_s3 = inlined_call_operand.vmem [shape: f32[1,8,128], index: 3, kind: output, shape index: {0}]   ;;  %s412_s4 = inlined_call_operand.vmem [shape: f32[1,8,128], index: 4, kind: output, shape index: {1}]  }
   0x1   :  { %v326_v0 = vld [vmem:[%s408_s1] sm:$0xff]   ;;  %v327_v1 = vld [vmem:[%s408_s1 + $0x8] sm:$0xff]   ;;  %v328_v2 = vld [vmem:[%s408_s1 + $0x10] sm:$0xff]  }
   0x2   :  { %285 = vmatprep.subr.bf16.mxu0 %v326_v0  ;;  %309 = vmatprep.subr.bf16.mxu1 %v326_v0  ;;  %v329_v3 = vld [vmem:[%s408_s1 + $0x18] sm:$0xff]   ;;  %v334_v4 = vld [vmem:[%s409_s0] sm:$0xff]   ;;  %v336_v5 = vld [vmem:[%s409_s0 + $0x10] sm:$0xff]  }
   0x3   :  { %286 = vmatpush3.bf16.msra.mxu0 %v326_v0  ;;  %317 = vmatpush3.bf16.msra.mxu1 %v326_v0  ;;  %v330_v6 = vld [vmem:[%s408_s1 + $0x20] sm:$0xff]   ;;  %v331_v7 = vld [vmem:[%s408_s1 + $0x28] sm:$0xff]   ;;  %v332_v8 = vld [vmem:[%s408_s1 + $0x30] sm:$0xff]  }
   0x4   :  { %287 = vmatprep.subr.bf16.mxu0 %v327_v1  ;;  %310 = vmatprep.subr.bf16.mxu1 %v327_v1  ;;  %v333_v9 = vld [vmem:[%s408_s1 + $0x38] sm:$0xff]   ;;  %v335_v10 = vld [vmem:[%s409_s0 + $0x8] sm:$0xff]   ;;  %v260_v12 = vld [vmem:[%s410_s2] ss:$0 sm:$0xff] }
   0x5   :  { %301 = vmatprep.mubr.bf16.mxu0 %v334_v4  ;;  %305 = vmatprep.mubr.bf16.mxu1 %v336_v5  ;;  %v337_v11 = vld [vmem:[%s409_s0 + $0x18] ss:$0 sps:$4 sm:$0xff]  }
   0x7   :  { %288 = vmatpush3.bf16.msra.mxu0 %v327_v1  ;;  %318 = vmatpush3.bf16.msra.mxu1 %v327_v1 }
   0x8   :  { %289 = vmatprep.subr.bf16.mxu0 %v328_v2  ;;  %311 = vmatprep.subr.bf16.mxu1 %v328_v2 }
   0xb   :  { %290 = vmatpush3.bf16.msra.mxu0 %v328_v2  ;;  %319 = vmatpush3.bf16.msra.mxu1 %v328_v2 }
   0xc   :  { %291 = vmatprep.subr.bf16.mxu0 %v329_v3  ;;  %312 = vmatprep.subr.bf16.mxu1 %v329_v3 }
   0xf   :  { %292 = vmatpush3.bf16.msra.mxu0 %v329_v3  ;;  %320 = vmatpush3.bf16.msra.mxu1 %v329_v3 }
  0x10   :  { %293 = vmatprep.subr.bf16.mxu0 %v330_v6  ;;  %313 = vmatprep.subr.bf16.mxu1 %v330_v6 }
  0x13   :  { %294 = vmatpush3.bf16.msra.mxu0 %v330_v6  ;;  %321 = vmatpush3.bf16.msra.mxu1 %v330_v6 }
  0x14   :  { %295 = vmatprep.subr.bf16.mxu0 %v331_v7  ;;  %314 = vmatprep.subr.bf16.mxu1 %v331_v7 }
  0x17   :  { %296 = vmatpush3.bf16.msra.mxu0 %v331_v7  ;;  %322 = vmatpush3.bf16.msra.mxu1 %v331_v7 }
  0x18   :  { %297 = vmatprep.subr.bf16.mxu0 %v332_v8  ;;  %315 = vmatprep.subr.bf16.mxu1 %v332_v8 }
  0x1b   :  { %298 = vmatpush3.bf16.msra.mxu0 %v332_v8  ;;  %323 = vmatpush3.bf16.msra.mxu1 %v332_v8 }
  0x1c   :  { %299 = vmatprep.subr.bf16.mxu0 %v333_v9  ;;  %316 = vmatprep.subr.bf16.mxu1 %v333_v9 }
  0x1f   :  { %300 = vmatpush3.bf16.msra.mxu0 %v333_v9  ;;  %324 = vmatpush3.bf16.msra.mxu1 %v333_v9 }
  0x22   :  { %302 = vmatmul.mubr.bf16.vlgmr.msra.gmra.mrb[0].mxu0 %v335_v10  ;;  %306 = vmatmul.mubr.bf16.vlgmr.msra.gmra.mrb[0].mxu1 %v337_v11 }
  0xf5   :  { %v303_v13 = vpop.f32.mrb[0].mxu0  ;;  %v307_v14 = vpop.f32.mrb[0].mxu1 }
  0xf6   :  { %v179_v15 = vpop.f32.mrb[1].mxu0  ;;  %v195_v16 = vpop.f32.mrb[1].mxu1  ;;  %v188_v22 = vadd.f32 %v303_v13, %v260_v12  ;;  %v204_v37 = vadd.f32 %v307_v14, %v260_v12 }
  0xf7   :  { %v180_v17 = vadd.f32 %v260_v12, %v179_v15  ;;  %v304_v18 = vpop.f32.mrb[2].mxu0  ;;  %v308_v19 = vpop.f32.mrb[2].mxu1  ;;  %v196_v24 = vadd.f32 %v260_v12, %v195_v16 }
  0xf8   :  { %v182_v20 = vpop.f32.mrb[3].mxu0  ;;  %v198_v21 = vpop.f32.mrb[3].mxu1  ;;  %v191_v26 = vadd.f32 %v304_v18, %v260_v12  ;;  %v227_v29 = vmul.f32 %v188_v22, %v188_v22  ;;  %v231_v43 = vmul.f32 %v204_v37, %v204_v37 }
  0xf9   :  { %v183_v23 = vadd.f32 %v260_v12, %v182_v20  ;;  %v225_v25 = vmul.f32 %v180_v17, %v180_v17  ;;  %v229_v32 = vmul.f32 %v196_v24, %v196_v24  ;;  %v199_v36 = vadd.f32 %v260_v12, %v198_v21 }
  0xfa   :  { %v228_v33 = vmul.f32 %v191_v26, %v191_v26 }
  0xfb   :  { %v210_v27 = vadd.f32 %v183_v23, %v180_v17  ;;  %v226_v28 = vmul.f32 %v183_v23, %v183_v23  ;;  %v230_v42 = vmul.f32 %v199_v36, %v199_v36 }
  0xfd   :  { %v211_v30 = vadd.f32 %v210_v27, %v188_v22  ;;  %v232_v31 = vadd.f32 %v226_v28, %v225_v25 }
  0xff   :  { %v233_v34 = vadd.f32 %v232_v31, %v227_v29  ;;  %v212_v35 = vadd.f32 %v211_v30, %v191_v26 }
 0x101   :  { %v213_v38 = vadd.f32 %v212_v35, %v196_v24  ;;  %v234_v39 = vadd.f32 %v233_v34, %v228_v33 }
 0x103   :  { %v235_v40 = vadd.f32 %v234_v39, %v229_v32  ;;  %v214_v41 = vadd.f32 %v213_v38, %v199_v36 }
 0x105   :  { %v215_v44 = vadd.f32 %v214_v41, %v204_v37  ;;  %v236_v45 = vadd.f32 %v235_v40, %v230_v42 }
 0x107   :  { %v216_v46 = vrot.slane %v215_v44, 4  ;;  %v237_v47 = vadd.f32 %v236_v45, %v231_v43 }
 0x109   :  { %v217_v48 = vadd.f32 %v216_v46, %v215_v44  ;;  %v238_v49 = vrot.slane %v237_v47, 4 }
 0x10b   :  { %v218_v50 = vrot.slane %v217_v48, 2  ;;  %v239_v51 = vadd.f32 %v238_v49, %v237_v47 }
 0x10d   :  { %v219_v52 = vadd.f32 %v218_v50, %v217_v48  ;;  %v240_v53 = vrot.slane %v239_v51, 2 }
 0x10f   :  { %v220_v54 = vrot.slane %v219_v52, 1  ;;  %v241_v55 = vadd.f32 %v240_v53, %v239_v51 }
 0x111   :  { %v221_v56 = vadd.f32 %v220_v54, %v219_v52  ;;  %v242_v57 = vrot.slane %v241_v55, 1 }
 0x113   :  { %v243_v58 = vadd.f32 %v242_v57, %v241_v55  ;;  %223 = vst [vmem:[%s411_s3] sm:$0xff] %v221_v56 }
 0x115   :  { %245 = vst [vmem:[%s412_s4] sm:$0xff] %v243_v58 }

// kernel: _mlp_forward_padded.3
= control target key start
LH: loop header
LB: loop body
LE: loop exit
PB: predicated region body
PF: predicated region fallthrough
CT: control target
= control target key end

     0   :  { %s625_s1 = inlined_call_operand.vmem [shape: bf16[128,128], index: 1, kind: input, shape index: {}]   ;;  %s626_s0 = inlined_call_operand.vmem [shape: bf16[56,128], index: 0, kind: input, shape index: {}]   ;;  %s627_s5 = inlined_call_operand.vmem [shape: bf16[128,128], index: 5, kind: input, shape index: {}]   ;;  %s628_s2 = inlined_call_operand.vmem [shape: f32[1,128], index: 2, kind: input, shape index: {}]   ;;  %s629_s3 = inlined_call_operand.vmem [shape: f32[1,128], index: 3, kind: input, shape index: {}]   ;;  %s630_s4 = inlined_call_operand.vmem [shape: f32[1,128], index: 4, kind: input, shape index: {}]   ;;  %s631_s6 = inlined_call_operand.vmem [shape: f32[1,128], index: 6, kind: input, shape index: {}]   ;;  %s632_s7 = inlined_call_operand.vmem [shape: f32[56,128], index: 7, kind: output, shape index: {}]  }
   0x1   :  { %v472_v0 = vld [vmem:[%s625_s1] sm:$0xff]   ;;  %v473_v1 = vld [vmem:[%s625_s1 + $0x8] sm:$0xff]   ;;  %v474_v2 = vld [vmem:[%s625_s1 + $0x10] sm:$0xff]  }
   0x2   :  { %424 = vmatprep.subr.bf16.mxu0 %v472_v0  ;;  %v475_v3 = vld [vmem:[%s625_s1 + $0x18] sm:$0xff]   ;;  %v480_v4 = vld [vmem:[%s626_s0] sm:$0xff]   ;;  %v485_v7 = vld [vmem:[%s627_s5 + $0x8] sm:$0xff]  }
   0x3   :  { %425 = vmatpush3.bf16.msra.mxu0 %v472_v0  ;;  %440 = vmatprep.mubr.bf16.mxu0 %v480_v4  ;;  %v476_v5 = vld [vmem:[%s625_s1 + $0x20] sm:$0xff]   ;;  %v477_v8 = vld [vmem:[%s625_s1 + $0x28] sm:$0xff]   ;;  %v486_v9 = vld [vmem:[%s627_s5 + $0x10] sm:$0xff]  }
   0x4   :  { %426 = vmatprep.subr.bf16.mxu0 %v473_v1  ;;  %v484_v6 = vld [vmem:[%s627_s5] sm:$0xff]   ;;  %v478_v10 = vld [vmem:[%s625_s1 + $0x30] sm:$0xff]   ;;  %v487_v11 = vld [vmem:[%s627_s5 + $0x18] sm:$0xff]  }
   0x5   :  { %448 = vmatprep.subr.bf16.mxu1 %v484_v6  ;;  %v479_v12 = vld [vmem:[%s625_s1 + $0x38] sm:$0xff]   ;;  %v488_v13 = vld [vmem:[%s627_s5 + $0x20] sm:$0xff]   ;;  %v481_v14 = vld [vmem:[%s626_s0 + $0x8] sm:$0xff]  }
   0x6   :  { %449 = vmatpush3.bf16.msra.mxu1 %v484_v6  ;;  %v482_v15 = vld [vmem:[%s626_s0 + $0x10] sm:$0xff]   ;;  %v483_v16 = vld [vmem:[%s626_s0 + $0x18] ss:$0 sps:$4 sm:$0xff]   ;;  %v489_v17 = vld [vmem:[%s627_s5 + $0x28] sm:$0xff]  }
   0x7   :  { %427 = vmatpush3.bf16.msra.mxu0 %v473_v1  ;;  %450 = vmatprep.subr.bf16.mxu1 %v485_v7  ;;  %v490_v18 = vld [vmem:[%s627_s5 + $0x30] sm:$0xff]   ;;  %v491_v19 = vld [vmem:[%s627_s5 + $0x38] sm:$0xff]   ;;  %v376_v20 = vld [vmem:[%s628_s2] ss:$0 sm:$0xff] }
   0x8   :  { %428 = vmatprep.subr.bf16.mxu0 %v474_v2  ;;  %v389_v22 = vld [vmem:[%s629_s3] ss:$0 sm:$0xff] }
   0x9   :  { %v390_v25 = vld [vmem:[%s630_s4] ss:$0 sm:$0xff] }
   0xa   :  { %451 = vmatpush3.bf16.msra.mxu1 %v485_v7  ;;  %v391_v63 = vld [vmem:[%s631_s6] ss:$0 sm:$0xff] }
   0xb   :  { %429 = vmatpush3.bf16.msra.mxu0 %v474_v2  ;;  %452 = vmatprep.subr.bf16.mxu1 %v486_v9 }
   0xc   :  { %430 = vmatprep.subr.bf16.mxu0 %v475_v3 }
   0xe   :  { %453 = vmatpush3.bf16.msra.mxu1 %v486_v9 }
   0xf   :  { %431 = vmatpush3.bf16.msra.mxu0 %v475_v3  ;;  %454 = vmatprep.subr.bf16.mxu1 %v487_v11 }
  0x10   :  { %432 = vmatprep.subr.bf16.mxu0 %v476_v5 }
  0x12   :  { %455 = vmatpush3.bf16.msra.mxu1 %v487_v11 }
  0x13   :  { %433 = vmatpush3.bf16.msra.mxu0 %v476_v5  ;;  %456 = vmatprep.subr.bf16.mxu1 %v488_v13 }
  0x14   :  { %434 = vmatprep.subr.bf16.mxu0 %v477_v8 }
  0x16   :  { %457 = vmatpush3.bf16.msra.mxu1 %v488_v13 }
  0x17   :  { %435 = vmatpush3.bf16.msra.mxu0 %v477_v8  ;;  %458 = vmatprep.subr.bf16.mxu1 %v489_v17 }
  0x18   :  { %436 = vmatprep.subr.bf16.mxu0 %v478_v10 }
  0x1a   :  { %459 = vmatpush3.bf16.msra.mxu1 %v489_v17 }
  0x1b   :  { %437 = vmatpush3.bf16.msra.mxu0 %v478_v10  ;;  %460 = vmatprep.subr.bf16.mxu1 %v490_v18 }
  0x1c   :  { %438 = vmatprep.subr.bf16.mxu0 %v479_v12 }
  0x1e   :  { %461 = vmatpush3.bf16.msra.mxu1 %v490_v18 }
  0x1f   :  { %439 = vmatpush3.bf16.msra.mxu0 %v479_v12  ;;  %462 = vmatprep.subr.bf16.mxu1 %v491_v19 }
  0x22   :  { %441 = vmatmul.mubr.bf16.vlgmr.msra.gmra.mrb[0].mxu0 %v481_v14  ;;  %463 = vmatpush3.bf16.msra.mxu1 %v491_v19 }
  0x23   :  { %444 = vmatprep.mubr.bf16.mxu0 %v482_v15 }
  0x2a   :  { %445 = vmatmul.mubr.bf16.gmra.mrb[4].mxu0 %v483_v16 }
  0xf5   :  { %v442_v21 = vpop.f32.mrb[0].mxu0 }
  0xf6   :  { %v170_v23 = vadd.f32 %v442_v21, %v376_v20  ;;  %v161_v24 = vpop.f32.mrb[1].mxu0 }
  0xf7   :  { %v162_v26 = vadd.f32 %v376_v20, %v161_v24  ;;  %v443_v27 = vpop.f32.mrb[2].mxu0 }
  0xf8   :  { %v200_v28 = vmul.f32 %v389_v22, %v170_v23  ;;  %v173_v29 = vadd.f32 %v443_v27, %v376_v20  ;;  %v164_v30 = vpop.f32.mrb[3].mxu0 }
  0xf9   :  { %v198_v31 = vmul.f32 %v389_v22, %v162_v26  ;;  %v165_v32 = vadd.f32 %v376_v20, %v164_v30 }
  0xfa   :  { %v214_v33 = vadd.f32 %v390_v25, %v200_v28  ;;  %v201_v34 = vmul.f32 %v389_v22, %v173_v29 }
  0xfb   :  { %v199_v35 = vmul.f32 %v389_v22, %v165_v32  ;;  %v212_v36 = vadd.f32 %v390_v25, %v198_v31 }
  0xfc   :  { %v215_v37 = vadd.f32 %v390_v25, %v201_v34  ;;  %v221_v40 = vmax.f32 %v214_v33, 0.0 }
  0xfd   :  { %v446_v38 = vpop.f32.mrb[4].mxu0  ;;  %v213_v39 = vadd.f32 %v390_v25, %v199_v35  ;;  %v219_v46 = vmax.f32 %v212_v36, 0.0 }
  0xfe   :  { %v222_v41 = vmax.f32 %v215_v37, 0.0  ;;  %v186_v42 = vadd.f32 %v446_v38, %v376_v20  ;;  %v177_v43 = vpop.f32.mrb[5].mxu0 }
  0xff   :  { %v178_v44 = vadd.f32 %v376_v20, %v177_v43  ;;  %v447_v45 = vpop.f32.mrb[6].mxu0  ;;  %v220_v47 = vmax.f32 %v213_v39, 0.0 }
 0x100   :  { %v204_v48 = vmul.f32 %v389_v22, %v186_v42  ;;  %v180_v49 = vpop.f32.mrb[7].mxu0  ;;  %v227_v50 = vpack.c.bf16 %v222_v41, %v221_v40 }
 0x101   :  { %v202_v51 = vmul.f32 %v389_v22, %v178_v44  ;;  %v181_v52 = vadd.f32 %v376_v20, %v180_v49  ;;  %v226_v53 = vpack.c.bf16 %v220_v47, %v219_v46 }
 0x102   :  { %v218_v54 = vadd.f32 %v390_v25, %v204_v48 }
 0x103   :  { %v216_v55 = vadd.f32 %v390_v25, %v202_v51  ;;  %v203_v56 = vmul.f32 %v389_v22, %v181_v52  ;;  %464 = vmatprep.mubr.bf16.mxu1 %v226_v53 }
 0x104   :  { %465 = vmatmul.mubr.bf16.vlgmr.msra.gmra.mrb[0].mxu1 %v227_v50  ;;  %v225_v58 = vmax.f32 %v218_v54, 0.0 }
 0x105   :  { %v217_v57 = vadd.f32 %v390_v25, %v203_v56  ;;  %v223_v59 = vmax.f32 %v216_v55, 0.0 }
 0x106   :  { %v229_v62 = vpack.c.bf16 %v225_v58, %v225_v58 }
 0x107   :  { %v224_v60 = vmax.f32 %v217_v57, 0.0 }
 0x109   :  { %v228_v61 = vpack.c.bf16 %v224_v60, %v223_v59 }
 0x10b   :  { %468 = vmatprep.mubr.bf16.mxu1 %v228_v61 }
 0x10c   :  { %469 = vmatmul.mubr.bf16.gmra.mrb[4].mxu1 %v229_v62 }
 0x1d7   :  { %v466_v0 = vpop.f32.mrb[0].mxu1 }
 0x1d8   :  { %v344_v1 = vadd.f32 %v466_v0, %v391_v63  ;;  %v335_v2 = vpop.f32.mrb[1].mxu1 }
 0x1d9   :  { %v336_v3 = vadd.f32 %v391_v63, %v335_v2  ;;  %v467_v4 = vpop.f32.mrb[2].mxu1 }
 0x1da   :  { %367 = vst [vmem:[%s632_s7 + $0x10] sm:$0xff] %v344_v1  ;;  %v347_v5 = vadd.f32 %v467_v4, %v391_v63  ;;  %v338_v6 = vpop.f32.mrb[3].mxu1 }
 0x1db   :  { %365 = vst [vmem:[%s632_s7] sm:$0xff] %v336_v3  ;;  %v339_v7 = vadd.f32 %v391_v63, %v338_v6 }
 0x1dc   :  { %368 = vst [vmem:[%s632_s7 + $0x18] sm:$0xff] %v347_v5 }
 0x1dd   :  { %366 = vst [vmem:[%s632_s7 + $0x8] sm:$0xff] %v339_v7 }
 0x1df   :  { %v470_v8 = vpop.f32.mrb[4].mxu1 }
 0x1e0   :  { %v360_v9 = vadd.f32 %v470_v8, %v391_v63  ;;  %v351_v10 = vpop.f32.mrb[5].mxu1 }
 0x1e1   :  { %v352_v11 = vadd.f32 %v391_v63, %v351_v10  ;;  %v471_v12 = vpop.f32.mrb[6].mxu1 }
 0x1e2   :  { %371 = vst [vmem:[%s632_s7 + $0x30] sm:$0xff] %v360_v9  ;;  %v354_v13 = vpop.f32.mrb[7].mxu1 }
 0x1e3   :  { %369 = vst [vmem:[%s632_s7 + $0x20] sm:$0xff] %v352_v11  ;;  %v355_v14 = vadd.f32 %v391_v63, %v354_v13 }
 0x1e5   :  { %370 = vst [vmem:[%s632_s7 + $0x28] sm:$0xff] %v355_v14 }

</bundles_post_ra>
